<compile_context>
chip_gen: v7x
topology: tpu7x:2x2x1
jax: 0.10.0
libtpu: 0.0.40
codegen_flags: <defaults>
</compile_context>

<pallas_src>
import functools

import jax
import jax.numpy as jnp
from jax import lax
from jax.experimental import pallas as pl
from jax.experimental.pallas import tpu as pltpu


def _round_up(x, m):
    return (x + m - 1) // m * m


def _skipgram_kernel(ids_ref, emb_ref, w_ref, b_ref, out_ref,
                     x_f32_ref, x_bf16_ref, *, tile_m, gather_unroll):
    """One grid step at (token tile i, vocab tile j).

    ids_ref    : (N_pad,)            int32  SMEM (scalar prefetch)
    emb_ref    : (V_rows_pad, E_pad) f32    VMEM-resident embedding table
    w_ref      : (E_pad, TN)         bf16   linear-weight vocab tile (pre-T)
    b_ref      : (1, TN)             f32    bias vocab tile
    out_ref    : (TM, TN)                   logits tile
    x_f32_ref  : (TM, E_pad)         f32    gathered embedding rows
    x_bf16_ref : (TM, E_pad)         bf16   gathered rows, cast once per tile
    """
    i = pl.program_id(0)   # token tile (outer, "parallel")
    j = pl.program_id(1)   # vocab tile (inner, "arbitrary"; usually extent 1)

    # Gather the embedding rows for this token tile exactly once (j == 0 fires
    # once per token tile because the vocab axis is the inner grid axis).
    # Pure in-VMEM dynamic-slice row copies -- no DMA issue/wait overhead.
    @pl.when(j == 0)
    def _gather():
        base = i * tile_m

        def copy_row(r, carry):
            tok = ids_ref[base + r]
            x_f32_ref[pl.ds(r, 1), :] = emb_ref[pl.ds(tok, 1), :]
            return carry

        lax.fori_loop(0, tile_m, copy_row, 0, unroll=gather_unroll)
        # Hoisted cast: once per token tile, reused for every vocab tile.
        x_bf16_ref[...] = x_f32_ref[...].astype(jnp.bfloat16)

    # bf16 x bf16 MXU matmul with f32 accumulation; bias add in f32.
    logits = jnp.dot(x_bf16_ref[...], w_ref[...],
                     preferred_element_type=jnp.float32)        # (TM, TN)
    out_ref[...] = (logits + b_ref[...]).astype(out_ref.dtype)


def prepare_params(emb_table, lin_w, lin_b):
    """One-time parameter massaging, kept OUT of the per-call jitted path:
      * embedding table -> f32, rows padded to a multiple of 8, columns (E)
        zero-padded to a multiple of 128 (MXU-friendly contraction dim),
      * linear weight   -> transposed to (E_pad, V_pad), bf16,
      * bias            -> (1, V_pad), f32.
    Zero padding in E is exact (zero activation cols x zero weight rows);
    padded vocab columns are sliced off after the kernel."""
    V, E = emb_table.shape
    assert lin_w.shape == (V, E) and lin_b.shape == (V,)
    e_pad = _round_up(E, 128)
    v_pad = _round_up(V, 128)
    v_rows_pad = _round_up(V, 8)

    emb = jnp.zeros((v_rows_pad, e_pad), jnp.float32)
    emb = emb.at[:V, :E].set(emb_table.astype(jnp.float32))

    w_t = jnp.zeros((e_pad, v_pad), jnp.bfloat16)
    w_t = w_t.at[:E, :V].set(lin_w.T.astype(jnp.bfloat16))

    b2 = jnp.zeros((1, v_pad), jnp.float32)
    b2 = b2.at[:, :V].set(lin_b.astype(jnp.float32))
    return emb, w_t, b2


@functools.partial(jax.jit,
                   static_argnames=("vocab_size", "tile_m", "out_dtype"))
def skipgram_forward(inputs, emb, w_t, b2, *, vocab_size,
                     tile_m=256, out_dtype=jnp.float32):
    """inputs: (B, T) int32 token ids; returns logits (B, T, vocab_size)."""
    B, T = inputs.shape
    v_rows_pad, e_pad = emb.shape
    e_pad_w, v_pad = w_t.shape
    assert e_pad_w == e_pad and b2.shape == (1, v_pad)
    N = B * T

    # ---- Tile selection ----------------------------------------------------
    # Token tile: multiple of 8; the whole problem in one tile when small.
    tm = min(tile_m, _round_up(N, 8))
    n_pad = _round_up(N, tm)

    # Vocab tile: keep the full transposed weight VMEM-resident when it fits a
    # 48 MiB budget (safe on v7x's 64 MiB VMEM), so it is read from HBM once.
    weight_budget = 48 * 1024 * 1024
    if e_pad * v_pad * 2 <= weight_budget:
        tn = v_pad
    else:
        tn = 2048
        while v_pad % tn:
            tn -= 128            # terminates at 128 (v_pad is 128-aligned)

    # Embedding table must fit VMEM for the in-VMEM gather path.
    # TODO(synk): add an HBM aggregate-gather fallback for very large vocabs.
    emb_bytes = v_rows_pad * e_pad * 4
    assert emb_bytes <= 16 * 1024 * 1024, "embedding table too large for VMEM-resident gather"

    ids = jnp.zeros((n_pad,), jnp.int32).at[:N].set(
        inputs.reshape(-1).astype(jnp.int32))

    grid = (n_pad // tm, v_pad // tn)
    gather_unroll = True if tm <= 32 else 8

    out_itemsize = jnp.dtype(out_dtype).itemsize
    vmem_limit = (
        emb_bytes                           # VMEM-resident embedding table
        + 2 * e_pad * tn * 2                # weight tile (double-buffered)
        + 2 * tn * 4                        # bias tile
        + 2 * tm * tn * out_itemsize        # output tile (double-buffered)
        + tm * e_pad * (4 + 2)              # gather scratches (f32 + bf16)
        + (2 << 20)                         # headroom
    )
    vmem_limit = int(min(max(vmem_limit, 32 * 1024 * 1024), 128 * 1024 * 1024))

    out = pl.pallas_call(
        functools.partial(_skipgram_kernel, tile_m=tm,
                          gather_unroll=gather_unroll),
        out_shape=jax.ShapeDtypeStruct((n_pad, v_pad), out_dtype),
        grid_spec=pltpu.PrefetchScalarGridSpec(
            num_scalar_prefetch=1,                       # ids -> SMEM
            grid=grid,
            in_specs=[
                # Whole embedding table, VMEM-resident (constant block index
                # -> DMA'd once, never re-streamed across the grid).
                pl.BlockSpec((v_rows_pad, e_pad), lambda i, j, ids: (0, 0)),
                # Transposed-weight vocab tile (whole weight when tn == v_pad).
                pl.BlockSpec((e_pad, tn), lambda i, j, ids: (0, j)),
                pl.BlockSpec((1, tn), lambda i, j, ids: (0, j)),
            ],
            out_specs=pl.BlockSpec((tm, tn), lambda i, j, ids: (i, j)),
            scratch_shapes=[
                pltpu.VMEM((tm, e_pad), jnp.float32),    # gathered rows (f32)
                pltpu.VMEM((tm, e_pad), jnp.bfloat16),   # cast once per tile
            ],
        ),
        compiler_params=pltpu.CompilerParams(
            dimension_semantics=("parallel", "arbitrary"),
            vmem_limit_bytes=vmem_limit,
        ),
    )(ids, emb, w_t, b2)

    return out[:N, :vocab_size].reshape(B, T, vocab_size)


if __name__ == "__main__":
    # Small shapes consistent with the module:
    #   vocab_size = 128, embedding_dim = 32, context_size = 2 (unused in fwd)
    #   inputs: batch=2, seq=8 token indices
    VOCAB_SIZE = 128
    EMBED_DIM = 32
    CONTEXT_SIZE = 2
    B, T = 2, 8

    # Synthetic deterministic stand-in for the pickled word_to_idx vocab.
    word_to_idx = {f"word{i}": i for i in range(VOCAB_SIZE)}

    key = jax.random.PRNGKey(0)
    k_emb, k_w, k_b, k_ids = jax.random.split(key, 4)

    emb_table = jax.random.normal(k_emb, (VOCAB_SIZE, EMBED_DIM), dtype=jnp.float32)
    lin_w = jax.random.normal(k_w, (VOCAB_SIZE, EMBED_DIM), dtype=jnp.float32) * 0.1
    lin_b = jax.random.normal(k_b, (VOCAB_SIZE,), dtype=jnp.float32) * 0.1

    inputs = jax.random.randint(k_ids, (B, T), 0, VOCAB_SIZE, dtype=jnp.int32)

    # One-time param prep (transpose + bf16 cast + 128-padding), outside jit.
    emb, w_t, b2 = prepare_params(emb_table, lin_w, lin_b)

    logits = skipgram_forward(inputs, emb, w_t, b2, vocab_size=VOCAB_SIZE)
    jax.block_until_ready(logits)

    # Reference in plain f32 JAX (same math as the torch forward()).
    ref = jnp.take(emb_table, inputs, axis=0) @ lin_w.T + lin_b
    assert logits.shape == (B, T, VOCAB_SIZE)
    # bf16 weight/activation with f32 accumulation -> loosened tolerance
    # vs the f32 reference (precision deliberately below the torch module).
    assert jnp.allclose(logits, ref, atol=3e-2, rtol=3e-2)

    # TODO(synk): find_closest_embeddings / sent_to_emojis / embed_phrase are
    # host-side string/tokenizer utilities, not part of forward(); not kernels.

    print("KERNEL_OK")
</pallas_src>

<mosaic_0001>
module attributes {stable_mosaic.version = 11 : i64} {
  func.func @_skipgram_kernel(%arg0: i32, %arg1: i32, %arg2: memref<16xi32, #tpu.memory_space<smem>>, %arg3: memref<128x128xf32, #tpu.memory_space<vmem>>, %arg4: memref<128x128xbf16, #tpu.memory_space<vmem>>, %arg5: memref<1x128xf32, #tpu.memory_space<vmem>>, %arg6: memref<16x128xf32, #tpu.memory_space<vmem>>, %arg7: memref<16x128xf32, #tpu.memory_space<vmem>>, %arg8: memref<16x128xbf16, #tpu.memory_space<vmem>>) attributes {dimension_semantics = [#tpu.dimension_semantics<parallel>, #tpu.dimension_semantics<arbitrary>], iteration_bounds = array<i64: 1, 1>, scalar_prefetch = 1 : i64, scratch_operands = 2 : i64, tpu.core_type = #tpu.core_type<tc>, window_params = [{pipeline_mode = #tpu.pipeline_mode<synchronous>, transform_indices = @transform_0, window_bounds = array<i64: 128, 128>}, {transform_indices = @transform_1, window_bounds = array<i64: 128, 128>}, {transform_indices = @transform_2, window_bounds = array<i64: 1, 128>}, {transform_indices = @transform_3, window_bounds = array<i64: 16, 128>}]} {
    %c0_i32 = arith.constant 0 : i32
    %0 = arith.cmpi eq, %arg1, %c0_i32 : i32
    %1 = arith.extui %0 : i1 to i32
    %c0_i32_0 = arith.constant 0 : i32
    %2 = arith.cmpi ne, %1, %c0_i32_0 : i32
    scf.if %2 {
      %c16_i32 = arith.constant 16 : i32
      %10 = arith.muli %arg0, %c16_i32 : i32
      %c0_i32_8 = arith.constant 0 : i32
      %11 = arith.addi %10, %c0_i32_8 : i32
      %12 = arith.index_cast %11 : i32 to index
      %13 = memref.load %arg2[%12] : memref<16xi32, #tpu.memory_space<smem>>
      %14 = arith.index_cast %13 : i32 to index
      %c0_9 = arith.constant 0 : index
      %15 = vector.load %arg3[%14, %c0_9] : memref<128x128xf32, #tpu.memory_space<vmem>>, vector<1x128xf32>
      %16 = arith.index_cast %c0_i32_8 : i32 to index
      %c0_10 = arith.constant 0 : index
      %17 = vector.load %arg7[%16, %c0_10] : memref<16x128xf32, #tpu.memory_space<vmem>>, vector<1x128xf32>
      tpu.vector_store %arg7[%16, %c0_10], %15 {strides = array<i32>} : memref<16x128xf32, #tpu.memory_space<vmem>>, vector<1x128xf32>,
      %c1_i32 = arith.constant 1 : i32
      %18 = arith.addi %10, %c1_i32 : i32
      %19 = arith.index_cast %18 : i32 to index
      %20 = memref.load %arg2[%19] : memref<16xi32, #tpu.memory_space<smem>>
      %21 = arith.index_cast %20 : i32 to index
      %c0_11 = arith.constant 0 : index
      %22 = vector.load %arg3[%21, %c0_11] : memref<128x128xf32, #tpu.memory_space<vmem>>, vector<1x128xf32>
      %23 = arith.index_cast %c1_i32 : i32 to index
      %c0_12 = arith.constant 0 : index
      %24 = vector.load %arg7[%23, %c0_12] : memref<16x128xf32, #tpu.memory_space<vmem>>, vector<1x128xf32>
      tpu.vector_store %arg7[%23, %c0_12], %22 {strides = array<i32>} : memref<16x128xf32, #tpu.memory_space<vmem>>, vector<1x128xf32>,
      %c2_i32 = arith.constant 2 : i32
      %25 = arith.addi %10, %c2_i32 : i32
      %26 = arith.index_cast %25 : i32 to index
      %27 = memref.load %arg2[%26] : memref<16xi32, #tpu.memory_space<smem>>
      %28 = arith.index_cast %27 : i32 to index
      %c0_13 = arith.constant 0 : index
      %29 = vector.load %arg3[%28, %c0_13] : memref<128x128xf32, #tpu.memory_space<vmem>>, vector<1x128xf32>
      %30 = arith.index_cast %c2_i32 : i32 to index
      %c0_14 = arith.constant 0 : index
      %31 = vector.load %arg7[%30, %c0_14] : memref<16x128xf32, #tpu.memory_space<vmem>>, vector<1x128xf32>
      tpu.vector_store %arg7[%30, %c0_14], %29 {strides = array<i32>} : memref<16x128xf32, #tpu.memory_space<vmem>>, vector<1x128xf32>,
      %c3_i32 = arith.constant 3 : i32
      %32 = arith.addi %10, %c3_i32 : i32
      %33 = arith.index_cast %32 : i32 to index
      %34 = memref.load %arg2[%33] : memref<16xi32, #tpu.memory_space<smem>>
      %35 = arith.index_cast %34 : i32 to index
      %c0_15 = arith.constant 0 : index
      %36 = vector.load %arg3[%35, %c0_15] : memref<128x128xf32, #tpu.memory_space<vmem>>, vector<1x128xf32>
      %37 = arith.index_cast %c3_i32 : i32 to index
      %c0_16 = arith.constant 0 : index
      %38 = vector.load %arg7[%37, %c0_16] : memref<16x128xf32, #tpu.memory_space<vmem>>, vector<1x128xf32>
      tpu.vector_store %arg7[%37, %c0_16], %36 {strides = array<i32>} : memref<16x128xf32, #tpu.memory_space<vmem>>, vector<1x128xf32>,
      %c4_i32 = arith.constant 4 : i32
      %39 = arith.addi %10, %c4_i32 : i32
      %40 = arith.index_cast %39 : i32 to index
      %41 = memref.load %arg2[%40] : memref<16xi32, #tpu.memory_space<smem>>
      %42 = arith.index_cast %41 : i32 to index
      %c0_17 = arith.constant 0 : index
      %43 = vector.load %arg3[%42, %c0_17] : memref<128x128xf32, #tpu.memory_space<vmem>>, vector<1x128xf32>
      %44 = arith.index_cast %c4_i32 : i32 to index
      %c0_18 = arith.constant 0 : index
      %45 = vector.load %arg7[%44, %c0_18] : memref<16x128xf32, #tpu.memory_space<vmem>>, vector<1x128xf32>
      tpu.vector_store %arg7[%44, %c0_18], %43 {strides = array<i32>} : memref<16x128xf32, #tpu.memory_space<vmem>>, vector<1x128xf32>,
      %c5_i32 = arith.constant 5 : i32
      %46 = arith.addi %10, %c5_i32 : i32
      %47 = arith.index_cast %46 : i32 to index
      %48 = memref.load %arg2[%47] : memref<16xi32, #tpu.memory_space<smem>>
      %49 = arith.index_cast %48 : i32 to index
      %c0_19 = arith.constant 0 : index
      %50 = vector.load %arg3[%49, %c0_19] : memref<128x128xf32, #tpu.memory_space<vmem>>, vector<1x128xf32>
      %51 = arith.index_cast %c5_i32 : i32 to index
      %c0_20 = arith.constant 0 : index
      %52 = vector.load %arg7[%51, %c0_20] : memref<16x128xf32, #tpu.memory_space<vmem>>, vector<1x128xf32>
      tpu.vector_store %arg7[%51, %c0_20], %50 {strides = array<i32>} : memref<16x128xf32, #tpu.memory_space<vmem>>, vector<1x128xf32>,
      %c6_i32 = arith.constant 6 : i32
      %53 = arith.addi %10, %c6_i32 : i32
      %54 = arith.index_cast %53 : i32 to index
      %55 = memref.load %arg2[%54] : memref<16xi32, #tpu.memory_space<smem>>
      %56 = arith.index_cast %55 : i32 to index
      %c0_21 = arith.constant 0 : index
      %57 = vector.load %arg3[%56, %c0_21] : memref<128x128xf32, #tpu.memory_space<vmem>>, vector<1x128xf32>
      %58 = arith.index_cast %c6_i32 : i32 to index
      %c0_22 = arith.constant 0 : index
      %59 = vector.load %arg7[%58, %c0_22] : memref<16x128xf32, #tpu.memory_space<vmem>>, vector<1x128xf32>
      tpu.vector_store %arg7[%58, %c0_22], %57 {strides = array<i32>} : memref<16x128xf32, #tpu.memory_space<vmem>>, vector<1x128xf32>,
      %c7_i32 = arith.constant 7 : i32
      %60 = arith.addi %10, %c7_i32 : i32
      %61 = arith.index_cast %60 : i32 to index
      %62 = memref.load %arg2[%61] : memref<16xi32, #tpu.memory_space<smem>>
      %63 = arith.index_cast %62 : i32 to index
      %c0_23 = arith.constant 0 : index
      %64 = vector.load %arg3[%63, %c0_23] : memref<128x128xf32, #tpu.memory_space<vmem>>, vector<1x128xf32>
      %65 = arith.index_cast %c7_i32 : i32 to index
      %c0_24 = arith.constant 0 : index
      %66 = vector.load %arg7[%65, %c0_24] : memref<16x128xf32, #tpu.memory_space<vmem>>, vector<1x128xf32>
      tpu.vector_store %arg7[%65, %c0_24], %64 {strides = array<i32>} : memref<16x128xf32, #tpu.memory_space<vmem>>, vector<1x128xf32>,
      %c8_i32 = arith.constant 8 : i32
      %67 = arith.addi %10, %c8_i32 : i32
      %68 = arith.index_cast %67 : i32 to index
      %69 = memref.load %arg2[%68] : memref<16xi32, #tpu.memory_space<smem>>
      %70 = arith.index_cast %69 : i32 to index
      %c0_25 = arith.constant 0 : index
      %71 = vector.load %arg3[%70, %c0_25] : memref<128x128xf32, #tpu.memory_space<vmem>>, vector<1x128xf32>
      %72 = arith.index_cast %c8_i32 : i32 to index
      %c0_26 = arith.constant 0 : index
      %73 = vector.load %arg7[%72, %c0_26] : memref<16x128xf32, #tpu.memory_space<vmem>>, vector<1x128xf32>
      tpu.vector_store %arg7[%72, %c0_26], %71 {strides = array<i32>} : memref<16x128xf32, #tpu.memory_space<vmem>>, vector<1x128xf32>,
      %c9_i32 = arith.constant 9 : i32
      %74 = arith.addi %10, %c9_i32 : i32
      %75 = arith.index_cast %74 : i32 to index
      %76 = memref.load %arg2[%75] : memref<16xi32, #tpu.memory_space<smem>>
      %77 = arith.index_cast %76 : i32 to index
      %c0_27 = arith.constant 0 : index
      %78 = vector.load %arg3[%77, %c0_27] : memref<128x128xf32, #tpu.memory_space<vmem>>, vector<1x128xf32>
      %79 = arith.index_cast %c9_i32 : i32 to index
      %c0_28 = arith.constant 0 : index
      %80 = vector.load %arg7[%79, %c0_28] : memref<16x128xf32, #tpu.memory_space<vmem>>, vector<1x128xf32>
      tpu.vector_store %arg7[%79, %c0_28], %78 {strides = array<i32>} : memref<16x128xf32, #tpu.memory_space<vmem>>, vector<1x128xf32>,
      %c10_i32 = arith.constant 10 : i32
      %81 = arith.addi %10, %c10_i32 : i32
      %82 = arith.index_cast %81 : i32 to index
      %83 = memref.load %arg2[%82] : memref<16xi32, #tpu.memory_space<smem>>
      %84 = arith.index_cast %83 : i32 to index
      %c0_29 = arith.constant 0 : index
      %85 = vector.load %arg3[%84, %c0_29] : memref<128x128xf32, #tpu.memory_space<vmem>>, vector<1x128xf32>
      %86 = arith.index_cast %c10_i32 : i32 to index
      %c0_30 = arith.constant 0 : index
      %87 = vector.load %arg7[%86, %c0_30] : memref<16x128xf32, #tpu.memory_space<vmem>>, vector<1x128xf32>
      tpu.vector_store %arg7[%86, %c0_30], %85 {strides = array<i32>} : memref<16x128xf32, #tpu.memory_space<vmem>>, vector<1x128xf32>,
      %c11_i32 = arith.constant 11 : i32
      %88 = arith.addi %10, %c11_i32 : i32
      %89 = arith.index_cast %88 : i32 to index
      %90 = memref.load %arg2[%89] : memref<16xi32, #tpu.memory_space<smem>>
      %91 = arith.index_cast %90 : i32 to index
      %c0_31 = arith.constant 0 : index
      %92 = vector.load %arg3[%91, %c0_31] : memref<128x128xf32, #tpu.memory_space<vmem>>, vector<1x128xf32>
      %93 = arith.index_cast %c11_i32 : i32 to index
      %c0_32 = arith.constant 0 : index
      %94 = vector.load %arg7[%93, %c0_32] : memref<16x128xf32, #tpu.memory_space<vmem>>, vector<1x128xf32>
      tpu.vector_store %arg7[%93, %c0_32], %92 {strides = array<i32>} : memref<16x128xf32, #tpu.memory_space<vmem>>, vector<1x128xf32>,
      %c12_i32 = arith.constant 12 : i32
      %95 = arith.addi %10, %c12_i32 : i32
      %96 = arith.index_cast %95 : i32 to index
      %97 = memref.load %arg2[%96] : memref<16xi32, #tpu.memory_space<smem>>
      %98 = arith.index_cast %97 : i32 to index
      %c0_33 = arith.constant 0 : index
      %99 = vector.load %arg3[%98, %c0_33] : memref<128x128xf32, #tpu.memory_space<vmem>>, vector<1x128xf32>
      %100 = arith.index_cast %c12_i32 : i32 to index
      %c0_34 = arith.constant 0 : index
      %101 = vector.load %arg7[%100, %c0_34] : memref<16x128xf32, #tpu.memory_space<vmem>>, vector<1x128xf32>
      tpu.vector_store %arg7[%100, %c0_34], %99 {strides = array<i32>} : memref<16x128xf32, #tpu.memory_space<vmem>>, vector<1x128xf32>,
      %c13_i32 = arith.constant 13 : i32
      %102 = arith.addi %10, %c13_i32 : i32
      %103 = arith.index_cast %102 : i32 to index
      %104 = memref.load %arg2[%103] : memref<16xi32, #tpu.memory_space<smem>>
      %105 = arith.index_cast %104 : i32 to index
      %c0_35 = arith.constant 0 : index
      %106 = vector.load %arg3[%105, %c0_35] : memref<128x128xf32, #tpu.memory_space<vmem>>, vector<1x128xf32>
      %107 = arith.index_cast %c13_i32 : i32 to index
      %c0_36 = arith.constant 0 : index
      %108 = vector.load %arg7[%107, %c0_36] : memref<16x128xf32, #tpu.memory_space<vmem>>, vector<1x128xf32>
      tpu.vector_store %arg7[%107, %c0_36], %106 {strides = array<i32>} : memref<16x128xf32, #tpu.memory_space<vmem>>, vector<1x128xf32>,
      %c14_i32 = arith.constant 14 : i32
      %109 = arith.addi %10, %c14_i32 : i32
      %110 = arith.index_cast %109 : i32 to index
      %111 = memref.load %arg2[%110] : memref<16xi32, #tpu.memory_space<smem>>
      %112 = arith.index_cast %111 : i32 to index
      %c0_37 = arith.constant 0 : index
      %113 = vector.load %arg3[%112, %c0_37] : memref<128x128xf32, #tpu.memory_space<vmem>>, vector<1x128xf32>
      %114 = arith.index_cast %c14_i32 : i32 to index
      %c0_38 = arith.constant 0 : index
      %115 = vector.load %arg7[%114, %c0_38] : memref<16x128xf32, #tpu.memory_space<vmem>>, vector<1x128xf32>
      tpu.vector_store %arg7[%114, %c0_38], %113 {strides = array<i32>} : memref<16x128xf32, #tpu.memory_space<vmem>>, vector<1x128xf32>,
      %c15_i32 = arith.constant 15 : i32
      %116 = arith.addi %10, %c15_i32 : i32
      %117 = arith.index_cast %116 : i32 to index
      %118 = memref.load %arg2[%117] : memref<16xi32, #tpu.memory_space<smem>>
      %119 = arith.index_cast %118 : i32 to index
      %c0_39 = arith.constant 0 : index
      %120 = vector.load %arg3[%119, %c0_39] : memref<128x128xf32, #tpu.memory_space<vmem>>, vector<1x128xf32>
      %121 = arith.index_cast %c15_i32 : i32 to index
      %c0_40 = arith.constant 0 : index
      %122 = vector.load %arg7[%121, %c0_40] : memref<16x128xf32, #tpu.memory_space<vmem>>, vector<1x128xf32>
      tpu.vector_store %arg7[%121, %c0_40], %120 {strides = array<i32>} : memref<16x128xf32, #tpu.memory_space<vmem>>, vector<1x128xf32>,
      %c16_i32_41 = arith.constant 16 : i32
      %c0_42 = arith.constant 0 : index
      %c0_43 = arith.constant 0 : index
      %123 = vector.load %arg7[%c0_42, %c0_43] : memref<16x128xf32, #tpu.memory_space<vmem>>, vector<16x128xf32>
      %124 = arith.truncf %123 : vector<16x128xf32> to vector<16x128xbf16>
      %c0_44 = arith.constant 0 : index
      %c0_45 = arith.constant 0 : index
      %125 = vector.load %arg8[%c0_44, %c0_45] : memref<16x128xbf16, #tpu.memory_space<vmem>>, vector<16x128xbf16>
      tpu.vector_store %arg8[%c0_44, %c0_45], %124 {strides = array<i32>} : memref<16x128xbf16, #tpu.memory_space<vmem>>, vector<16x128xbf16>,
    } else {
    }
    %c0 = arith.constant 0 : index
    %c0_1 = arith.constant 0 : index
    %3 = vector.load %arg8[%c0, %c0_1] : memref<16x128xbf16, #tpu.memory_space<vmem>>, vector<16x128xbf16>
    %c0_2 = arith.constant 0 : index
    %c0_3 = arith.constant 0 : index
    %4 = vector.load %arg4[%c0_2, %c0_3] : memref<128x128xbf16, #tpu.memory_space<vmem>>, vector<128x128xbf16>
    %cst = arith.constant dense<0.000000e+00> : vector<16x128xf32>
    %5 = tpu.matmul %3, %4, %cst {dimension_numbers = #tpu.dot_dimension_numbers<[1], [0], [0], [1], [0, 0, 1, 1], [], []>} : vector<16x128xbf16>, vector<128x128xbf16>, vector<16x128xf32> -> vector<16x128xf32>
    %c0_4 = arith.constant 0 : index
    %c0_5 = arith.constant 0 : index
    %6 = vector.load %arg5[%c0_4, %c0_5] : memref<1x128xf32, #tpu.memory_space<vmem>>, vector<1x128xf32>
    %7 = vector.broadcast %6 : vector<1x128xf32> to vector<16x128xf32>
    %8 = arith.addf %5, %7 : vector<16x128xf32>
    %c0_6 = arith.constant 0 : index
    %c0_7 = arith.constant 0 : index
    %9 = vector.load %arg6[%c0_6, %c0_7] : memref<16x128xf32, #tpu.memory_space<vmem>>, vector<16x128xf32>
    tpu.vector_store %arg6[%c0_6, %c0_7], %8 {strides = array<i32>} : memref<16x128xf32, #tpu.memory_space<vmem>>, vector<16x128xf32>,
    return
  }
  func.func @transform_0(%arg0: i32, %arg1: i32, %arg2: memref<16xi32, #tpu.memory_space<smem>>) -> (i32, i32) {
    %c0_i32 = arith.constant 0 : i32
    %c0_i32_0 = arith.constant 0 : i32
    %c0_i32_1 = arith.constant 0 : i32
    return %c0_i32, %c0_i32_0 : i32, i32
  }
  func.func @transform_1(%arg0: i32, %arg1: i32, %arg2: memref<16xi32, #tpu.memory_space<smem>>) -> (i32, i32) {
    %c0_i32 = arith.constant 0 : i32
    %c0_i32_0 = arith.constant 0 : i32
    return %c0_i32, %arg1 : i32, i32
  }
  func.func @transform_2(%arg0: i32, %arg1: i32, %arg2: memref<16xi32, #tpu.memory_space<smem>>) -> (i32, i32) {
    %c0_i32 = arith.constant 0 : i32
    %c0_i32_0 = arith.constant 0 : i32
    return %c0_i32, %arg1 : i32, i32
  }
  func.func @transform_3(%arg0: i32, %arg1: i32, %arg2: memref<16xi32, #tpu.memory_space<smem>>) -> (i32, i32) {
    %c0_i32 = arith.constant 0 : i32
    return %arg0, %arg1 : i32, i32
  }
}

</mosaic_0001>

<bundles_post_ra>
// kernel: skipgram_forward.1
= control target key start
LH: loop header
LB: loop body
LE: loop exit
PB: predicated region body
PF: predicated region fallthrough
CT: control target
= control target key end

     0   :  { %s558_s0 = inlined_call_operand.vmem [shape: s32[16], index: 0, kind: input, shape index: {}]   ;;  %s559_s1 = inlined_call_operand.hbm [shape: f32[128,128], index: 1, kind: input, shape index: {}]   ;;  %s560_s2 = inlined_call_operand.hbm [shape: bf16[128,128], index: 2, kind: input, shape index: {}]   ;;  %s561_s3 = inlined_call_operand.vmem [shape: f32[1,128], index: 3, kind: input, shape index: {}]   ;;  %s562_s4 = inlined_call_operand.hbm [shape: f32[16,128], index: 4, kind: output, shape index: {}]  }
   0x1   :  { %s9_s17 = sshll.u32 %s558_s0, 4  ;;  %s10_s17 = int_to_ptr.vmem [resolvable:$true] %s9_s17 }
   0x2   :  { %s359_s18 = scalar_lea.vmem %s10_s17, 16  ;;  %p364_p1 = scmp.lt.s32.totalorder %s10_s17, %s10_s17 }
   0x3   :  { %p360_p0 = scmp.ne.s32.totalorder %s10_s17, %s359_s18  ;;  %p365_p2 = scmp.lt.s32.totalorder %s359_s18, %s359_s18 }
   0x5   :  { %p366_p3 = por %p365_p2, %p364_p1 }
   0x7   :  { %p367_p4 = pnand %p366_p3, %p360_p0 }
   0x9   :  { %370 = shalt.err (!%p367_p4)  }
   0xa   :  { %s445_s19 = smov [#allocation5]  }
   0xb   :  { %12 = dma.vmem_to_smem %s10_s17, 16, %s445_s19, [#allocation4] }
   0xc   :  { %437 = dma.done.wait [#allocation4], 16 }
   0xd   :  { %438 = vsyncadd [#allocation4], 4294967280 }
   0xe   :  { %14 = sfence }
   0xf   :  { %15 = vsyncpa [#allocation7], 0 }
  0x10   :  { %16 = vsyncpa [#allocation10], 0 }
  0x11   :  { %17 = vsyncpa [#allocation8], 0  ;;  %s446_s20 = smov [#allocation6]   ;;  %s371_s23 = scalar_lea.hbm %s559_s1, 2048 }
  0x12   :  { %s23_s21 = sshll.u32 %s446_s20, 4  ;;  %p372_p5 = scmp.ne.s32.totalorder %s559_s1, %s371_s23  ;;  %s24_s21 = int_to_ptr.vmem [resolvable:$true] %s23_s21 }
  0x13   :  { %p375_p6 = scmp.lt.u32.totalorder %s371_s23, %s559_s1 }
  0x15   :  { %p377_p7 = pnand %p375_p6, %p372_p5 }
  0x17   :  { %380 = shalt.err (!%p377_p7)
}
  0x18   :  { %s381_s28 = scalar_lea.vmem %s24_s21, 2048  ;;  %p386_p9 = scmp.lt.s32.totalorder %s24_s21, %s24_s21 }
  0x19   :  { %p382_p8 = scmp.ne.s32.totalorder %s24_s21, %s381_s28  ;;  %p387_p10 = scmp.lt.s32.totalorder %s381_s28, %s381_s28 }
  0x1b   :  { %p388_p11 = por %p387_p10, %p386_p9 }
  0x1d   :  { %p389_p12 = pnand %p388_p11, %p382_p8 }
  0x1f   :  { %392 = shalt.err (!%p389_p12)
}
  0x20   :  { %s447_s29 = smov 128   ;;  %s448_s30 = smov 8  }
  0x21   :  { %29 = dma.hbm_to_vmem [thread:$0]  %s559_s1, 2048, %s24_s21, [#allocation7], %s447_s29, %s447_s29, %s448_s30  }
  0x22   :  { %s449_s7 = smov [#allocation9]   ;;  %s393_s11 = scalar_lea.hbm %s560_s2, 1024 }
  0x23   :  { %s35_s8 = sshll.u32 %s449_s7, 4  ;;  %p394_p13 = scmp.ne.s32.totalorder %s560_s2, %s393_s11  ;;  %s36_s8 = int_to_ptr.vmem [resolvable:$true] %s35_s8 }
  0x24   :  { %p397_p0 = scmp.lt.u32.totalorder %s393_s11, %s560_s2 }
  0x26   :  { %p399_p1 = pnand %p397_p0, %p394_p13 }
  0x28   :  { %402 = shalt.err (!%p399_p1)
}
  0x29   :  { %s403_s16 = scalar_lea.vmem %s36_s8, 1024  ;;  %p408_p3 = scmp.lt.s32.totalorder %s36_s8, %s36_s8 }
  0x2a   :  { %p404_p2 = scmp.ne.s32.totalorder %s36_s8, %s403_s16  ;;  %p409_p4 = scmp.lt.s32.totalorder %s403_s16, %s403_s16 }
  0x2c   :  { %p410_p5 = por %p409_p4, %p408_p3 }
  0x2e   :  { %p411_p6 = pnand %p410_p5, %p404_p2 }
  0x30   :  { %414 = shalt.err (!%p411_p6)
}
  0x31   :  { %s450_s1 = smov 64   ;;  %s451_s17 = smov 4  }
  0x32   :  { %41 = dma.hbm_to_vmem [thread:$0]  %s560_s2, 1024, %s36_s8, [#allocation10], %s450_s1, %s450_s1, %s451_s17  }
  0x33   :  { %439 = dma.done.wait [#allocation7], 2048  }
  0x34   :  { %440 = vsyncadd [#allocation7], 4294965248 }
  0x35   :  { %441 = dma.done.wait [#allocation10], 1024  }
  0x36   :  { %442 = vsyncadd [#allocation10], 4294966272  ;;  %v452_v0 = vmov 0.0   ;;  %vm453_vm0 = vmmov 0   ;;  %s56_s20 = sld [smem:[#allocation5]]  ;;  %s288_s21 = sld [smem:[#allocation5 + $0x1]] }
  0x37   :  { %321 = vmatprep.subr.bf16.mxu0 %v452_v0  ;;  %337 = vmatprep.mubr.msk.bf16.mxu0 %vm453_vm0, %v452_v0  ;;  %s289_s0 = sld [smem:[#allocation5 + $0x2]]  ;;  %s290_s22 = sld [smem:[#allocation5 + $0x3]]  ;;  %v351_v1 = vld [vmem:[#allocation9] sm:$0xff]   ;;  %v352_v2 = vld [vmem:[#allocation9 + $0x8] sm:$0xff]   ;;  %v353_v3 = vld [vmem:[#allocation9 + $0x10] sm:$0xff]  }
  0x38   :  { %s291_s23 = sld [smem:[#allocation5 + $0x4]]  ;;  %s512_s24 = sld [smem:[#allocation5 + $0x5]]  ;;  %322 = vmatpush3.bf16.msra.mxu0 %v351_v1  ;;  %v354_v4 = vld [vmem:[#allocation9 + $0x18] sm:$0xff]   ;;  %v355_v17 = vld [vmem:[#allocation9 + $0x20] sm:$0xff]   ;;  %v356_v18 = vld [vmem:[#allocation9 + $0x28] sm:$0xff]  }
  0x39   :  { %s514_s25 = sld [smem:[#allocation5 + $0x6]]  ;;  %s516_s2 = sld [smem:[#allocation5 + $0x7]]  ;;  %323 = vmatprep.subr.bf16.mxu0 %v452_v0  ;;  %v357_v23 = vld [vmem:[#allocation9 + $0x30] sm:$0xff]   ;;  %v358_v24 = vld [vmem:[#allocation9 + $0x38] sm:$0xff]   ;;  %v303_v28 = vld [vmem:[%s561_s3] ss:$0 sm:$0xff] }
  0x3a   :  { %s518_s26 = sld [smem:[#allocation5 + $0x8]]  ;;  %s520_s27 = sld [smem:[#allocation5 + $0x9]] }
  0x3b   :  { %s522_s28 = sld [smem:[#allocation5 + $0xa]]  ;;  %s524_s5 = sld [smem:[#allocation5 + $0xb]] }
  0x3c   :  { %324 = vmatpush3.bf16.msra.mxu0 %v352_v2  ;;  %s57_s6 = scalar_lea.vmem [#allocation6], %s56_s20  ;;  %s62_s7 = scalar_lea.vmem [#allocation6], %s288_s21 }
  0x3d   :  { %325 = vmatprep.subr.bf16.mxu0 %v452_v0  ;;  %v58_v5 = vld [vmem:[%s57_s6] sm:$0x1]  ;;  %s67_s8 = scalar_lea.vmem [#allocation6], %s289_s0  ;;  %s72_s9 = scalar_lea.vmem [#allocation6], %s290_s22 }
  0x3e   :  { %v63_v6 = vld [vmem:[%s62_s7] sm:$0x1]  ;;  %59 = vst [vmem:[#allocation2] sm:$0x1] %v58_v5  ;;  %s77_s10 = scalar_lea.vmem [#allocation6], %s291_s23  ;;  %s82_s11 = scalar_lea.vmem [#allocation6], %s512_s24 }
  0x3f   :  { %v68_v7 = vld [vmem:[%s67_s8] sm:$0x1]  ;;  %64 = vst [vmem:[#allocation2 + $0x1] sm:$0x1] %v63_v6  ;;  %s87_s12 = scalar_lea.vmem [#allocation6], %s514_s25  ;;  %s92_s13 = scalar_lea.vmem [#allocation6], %s516_s2 }
  0x40   :  { %69 = vst [vmem:[#allocation2 + $0x2] sm:$0x1] %v68_v7  ;;  %v73_v8 = vld [vmem:[%s72_s9] sm:$0x1]  ;;  %326 = vmatpush3.bf16.msra.mxu0 %v353_v3  ;;  %s97_s14 = scalar_lea.vmem [#allocation6], %s518_s26  ;;  %s102_s15 = scalar_lea.vmem [#allocation6], %s520_s27 }
  0x41   :  { %v78_v9 = vld [vmem:[%s77_s10] sm:$0x1]  ;;  %74 = vst [vmem:[#allocation2 + $0x3] sm:$0x1] %v73_v8  ;;  %327 = vmatprep.subr.bf16.mxu0 %v452_v0  ;;  %s107_s16 = scalar_lea.vmem [#allocation6], %s522_s28  ;;  %s112_s1 = scalar_lea.vmem [#allocation6], %s524_s5 }
  0x42   :  { %v83_v10 = vld [vmem:[%s82_s11] sm:$0x1]  ;;  %79 = vst [vmem:[#allocation2 + $0x4] sm:$0x1] %v78_v9  ;;  %s299_s17 = sld [smem:[#allocation5 + $0xc]]  ;;  %s300_s18 = sld [smem:[#allocation5 + $0xd]] }
  0x43   :  { %84 = vst [vmem:[#allocation2 + $0x5] sm:$0x1] %v83_v10  ;;  %v88_v11 = vld [vmem:[%s87_s12] sm:$0x1]  ;;  %s301_s19 = sld [smem:[#allocation5 + $0xe]]  ;;  %s302_s20 = sld [smem:[#allocation5 + $0xf]] }
  0x44   :  { %v93_v12 = vld [vmem:[%s92_s13] sm:$0x1]  ;;  %89 = vst [vmem:[#allocation2 + $0x6] sm:$0x1] %v88_v11  ;;  %328 = vmatpush3.bf16.msra.mxu0 %v354_v4  ;;  %s454_s2 = smov [#allocation11]  }
  0x45   :  { %94 = vst [vmem:[#allocation2 + $0x7] sm:$0x1] %v93_v12  ;;  %v98_v13 = vld [vmem:[%s97_s14] sm:$0x1]  ;;  %329 = vmatprep.subr.bf16.mxu0 %v452_v0  ;;  %s259_s26 = sshll.u32 %s454_s2, 4  ;;  %s260_s26 = int_to_ptr.vmem [resolvable:$true] %s259_s26 }
  0x46   :  { %v103_v14 = vld [vmem:[%s102_s15] sm:$0x1]  ;;  %99 = vst [vmem:[#allocation2 + $0x8] sm:$0x1] %v98_v13  ;;  %s415_s27 = scalar_lea.vmem %s260_s26, 256  ;;  %p420_p8 = scmp.lt.s32.totalorder %s260_s26, %s260_s26 }
  0x47   :  { %104 = vst [vmem:[#allocation2 + $0x9] sm:$0x1] %v103_v14  ;;  %v108_v15 = vld [vmem:[%s107_s16] sm:$0x1]  ;;  %p416_p7 = scmp.ne.s32.totalorder %s260_s26, %s415_s27  ;;  %p421_p9 = scmp.lt.s32.totalorder %s415_s27, %s415_s27 }
  0x48   :  { %v113_v16 = vld [vmem:[%s112_s1] sm:$0x1]  ;;  %109 = vst [vmem:[#allocation2 + $0xa] sm:$0x1] %v108_v15  ;;  %330 = vmatpush3.bf16.msra.mxu0 %v355_v17  ;;  %s117_s21 = scalar_lea.vmem [#allocation6], %s299_s17  ;;  %s122_s0 = scalar_lea.vmem [#allocation6], %s300_s18 }
  0x49   :  { %114 = vst [vmem:[#allocation2 + $0xb] sm:$0x1] %v113_v16  ;;  %331 = vmatprep.subr.bf16.mxu0 %v452_v0  ;;  %v118_v19 = vld [vmem:[%s117_s21] sm:$0x1]  ;;  %s127_s22 = scalar_lea.vmem [#allocation6], %s301_s19  ;;  %s132_s23 = scalar_lea.vmem [#allocation6], %s302_s20 }
  0x4a   :  { %119 = vst [vmem:[#allocation2 + $0xc] sm:$0x1] %v118_v19  ;;  %v123_v20 = vld [vmem:[%s122_s0] sm:$0x1]  ;;  %p422_p10 = por %p421_p9, %p420_p8 }
  0x4b   :  { %v128_v21 = vld [vmem:[%s127_s22] sm:$0x1]  ;;  %124 = vst [vmem:[#allocation2 + $0xd] sm:$0x1] %v123_v20 }
  0x4c   :  { %129 = vst [vmem:[#allocation2 + $0xe] sm:$0x1] %v128_v21  ;;  %v133_v22 = vld [vmem:[%s132_s23] sm:$0x1]  ;;  %332 = vmatpush3.bf16.msra.mxu0 %v356_v18  ;;  %v135_v25 = vld [vmem:[#allocation2] sm:$0xff]  ;;  %p423_p11 = pnand %p422_p10, %p416_p7 }
  0x4d   :  { %134 = vst [vmem:[#allocation2 + $0xf] sm:$0x1] %v133_v22  ;;  %333 = vmatprep.subr.bf16.mxu0 %v452_v0 }
  0x50   :  { %334 = vmatpush3.bf16.msra.mxu0 %v357_v23 }
  0x51   :  { %335 = vmatprep.subr.bf16.mxu0 %v452_v0 }
  0x54   :  { %v136_v26 = vld [vmem:[#allocation2 + $0x8] sm:$0xff]  ;;  %336 = vmatpush3.bf16.msra.mxu0 %v358_v24 }
  0x55   :  { %v137_v27 = vpack.c.bf16 %v136_v26, %v135_v25 }
  0x57   :  { %338 = vmatmul.mubr.bf16.vlgmr.msra.gmra.mrb[0].mxu0 %v137_v27 }
 0x12a   :  { %v245_v29 = vpop.f32.mrb[0].mxu0 }
 0x12b   :  { %v246_v30 = vadd.f32 %v303_v28, %v245_v29  ;;  %v339_v31 = vpop.f32.mrb[1].mxu0 }
 0x12c   :  { %v248_v32 = vpop.f32.mrb[2].mxu0 }
 0x12d   :  { %252 = vst [vmem:[#allocation11] sm:$0xff] %v246_v30  ;;  %v249_v33 = vadd.f32 %v303_v28, %v248_v32  ;;  %v340_v34 = vpop.f32.mrb[3].mxu0 }
 0x12f   :  { %253 = vst [vmem:[#allocation11 + $0x8] sm:$0xff] %v249_v33 }
 0x130   :  { %426 = shalt.err (!%p423_p11)
}
 0x131   :  { %s427_s5 = scalar_lea.hbm %s562_s4, 256 }
 0x132   :  { %p428_p12 = scmp.ne.s32.totalorder %s562_s4, %s427_s5  ;;  %p431_p13 = scmp.lt.u32.totalorder %s427_s5, %s562_s4 }
 0x134   :  { %p433_p0 = pnand %p431_p13, %p428_p12 }
 0x136   :  { %436 = shalt.err (!%p433_p0)
}
 0x137   :  { %265 = dma.vmem_to_hbm [thread:$0]  %s260_s26, 256, %s562_s4, [#allocation8], %s447_s29, %s447_s29, %s448_s30  }
 0x138   :  { %443 = dma.done.wait [#allocation8], 256  }
 0x139   :  { %444 = vsyncadd [#allocation8], 4294967040 }
 0x13a   :  { %269 = vsyncpa [#allocation7], 1 }
 0x13b   :  { %270 = vsyncpa [#allocation10], 1 }
 0x13c   :  { %271 = vsyncpa [#allocation8], 1 }

</bundles_post_ra>
